<compile_context>
chip_gen: v6e
topology: v6e:2x2x1
jax: 0.10.0
libtpu: 0.0.40
codegen_flags: <defaults>
</compile_context>

<pallas_src>
import functools

import jax
import jax.numpy as jnp
from jax.experimental import pallas as pl
from jax.experimental.pallas import tpu as pltpu

EPS = 1e-5


def _round_up(x, m):
    return (x + m - 1) // m * m


# --------------------------------------------------------------------------
# Pallas kernels
# --------------------------------------------------------------------------

def _gemm_kernel(*refs, apply_relu, has_residual):
    """Tiled (tm,tk)x(tk,tn) GEMM with f32 accumulator and fused epilogue:
       out = maybe_relu(acc * scale + bias [+ residual])."""
    if has_residual:
        x_ref, w_ref, s_ref, b_ref, r_ref, o_ref, acc_ref = refs
    else:
        x_ref, w_ref, s_ref, b_ref, o_ref, acc_ref = refs
        r_ref = None

    @pl.when(pl.program_id(2) == 0)
    def _():
        acc_ref[...] = jnp.zeros_like(acc_ref)

    acc_ref[...] += jnp.dot(x_ref[...], w_ref[...],
                            preferred_element_type=jnp.float32)

    @pl.when(pl.program_id(2) == pl.num_programs(2) - 1)
    def _():
        out = acc_ref[...] * s_ref[...] + b_ref[...]
        if has_residual:
            out = out + r_ref[...].astype(jnp.float32)
        if apply_relu:
            out = jnp.maximum(out, 0.0)
        o_ref[...] = out.astype(o_ref.dtype)


def _maxpool_kernel(x_ref, o_ref):
    """Running max over the tap grid axis; output block stays VMEM-resident."""
    t = pl.program_id(1)

    @pl.when(t == 0)
    def _():
        o_ref[...] = x_ref[0]

    @pl.when(t > 0)
    def _():
        o_ref[...] = jnp.maximum(o_ref[...], x_ref[0])


def _avgpool_kernel(x_ref, o_ref):
    o_ref[...] = jnp.mean(x_ref[...].astype(jnp.float32), axis=1)


def _head_kernel(x_ref, w1_ref, b1_ref, w2_ref, b2_ref, o_ref):
    h = jnp.dot(x_ref[...], w1_ref[...], preferred_element_type=jnp.float32)
    h = jnp.maximum(h + b1_ref[...], 0.0)
    # Dropout: identity (eval mode).
    out = jnp.dot(h.astype(jnp.bfloat16), w2_ref[...],
                  preferred_element_type=jnp.float32)
    o_ref[...] = (out + b2_ref[...]).astype(o_ref.dtype)


# --------------------------------------------------------------------------
# GEMM wrapper (tiling / padding / bf16 casting)
# --------------------------------------------------------------------------

def _gemm_pallas(x, w, scale, bias, *, relu, residual=None,
                 out_dtype=jnp.bfloat16):
    """out = maybe_relu((x @ w) * scale + bias [+ residual])."""
    M, K = x.shape
    K2, N = w.shape
    assert K2 == K

    # ---- tile selection -------------------------------------------------
    if N < 128:                      # full-dim lane block (e.g. 64)
        tn, Np = N, N
    else:
        Np = _round_up(N, 128)
        tn = 256 if Np % 256 == 0 else 128
    if K < 128:                      # full-dim K block (e.g. 64)
        tk, Kp = K, K
    else:
        Kp = _round_up(K, 128)
        if Kp % 512 == 0:
            tk = 512
        elif Kp % 256 == 0:
            tk = 256
        else:
            tk = 128
    TM = 256
    Mp = _round_up(M, 8)
    if Mp <= TM:
        tm = Mp
    else:
        Mp = _round_up(M, TM)
        tm = TM

    # ---- operand prep (bf16 MXU inputs, zero-pad only where needed) -----
    xb = x.astype(jnp.bfloat16)
    wb = w.astype(jnp.bfloat16)
    if Mp != M or Kp != K:
        xb = jnp.pad(xb, ((0, Mp - M), (0, Kp - K)))
    if Kp != K or Np != N:
        wb = jnp.pad(wb, ((0, Kp - K), (0, Np - N)))
    s2 = scale.reshape(1, N).astype(jnp.float32)
    b2 = bias.reshape(1, N).astype(jnp.float32)
    if Np != N:
        s2 = jnp.pad(s2, ((0, 0), (0, Np - N)))
        b2 = jnp.pad(b2, ((0, 0), (0, Np - N)))

    in_specs = [
        pl.BlockSpec((tm, tk), lambda i, j, k: (i, k)),
        pl.BlockSpec((tk, tn), lambda i, j, k: (k, j)),
        pl.BlockSpec((1, tn), lambda i, j, k: (0, j)),
        pl.BlockSpec((1, tn), lambda i, j, k: (0, j)),
    ]
    operands = [xb, wb, s2, b2]
    has_residual = residual is not None
    if has_residual:
        r = residual.astype(jnp.bfloat16)
        if Mp != M or Np != N:
            r = jnp.pad(r, ((0, Mp - M), (0, Np - N)))
        in_specs.append(pl.BlockSpec((tm, tn), lambda i, j, k: (i, j)))
        operands.append(r)

    out = pl.pallas_call(
        functools.partial(_gemm_kernel, apply_relu=relu,
                          has_residual=has_residual),
        out_shape=jax.ShapeDtypeStruct((Mp, Np), out_dtype),
        grid=(Mp // tm, Np // tn, Kp // tk),
        in_specs=in_specs,
        out_specs=pl.BlockSpec((tm, tn), lambda i, j, k: (i, j)),
        scratch_shapes=[pltpu.VMEM((tm, tn), jnp.float32)],
        compiler_params=pltpu.CompilerParams(
            dimension_semantics=("parallel", "parallel", "arbitrary")),
    )(*operands)

    if Mp != M or Np != N:
        out = out[:M, :N]
    return out


# --------------------------------------------------------------------------
# Conv / pool / head wrappers
# --------------------------------------------------------------------------

def _extract_patches(x, kh, kw, stride, pad, pad_value=0.0):
    """x: (N,H,W,C) -> list of kh*kw shifted views (N,Ho,Wo,C), Ho, Wo."""
    N, H, W, C = x.shape
    xp = jnp.pad(x, ((0, 0), (pad, pad), (pad, pad), (0, 0)),
                 constant_values=pad_value)
    Ho = (H + 2 * pad - kh) // stride + 1
    Wo = (W + 2 * pad - kw) // stride + 1
    cols = []
    for di in range(kh):
        for dj in range(kw):
            cols.append(xp[:, di:di + stride * Ho:stride,
                           dj:dj + stride * Wo:stride, :])
    return cols, Ho, Wo


@functools.partial(jax.jit, static_argnames=("k", "stride", "pad", "relu"))
def _conv_bn_impl(x, w, scale, bias, residual, *, k, stride, pad, relu):
    N, H, W, C = x.shape
    if k == 1:
        xs = x if stride == 1 else x[:, ::stride, ::stride, :]
        Ho, Wo = xs.shape[1], xs.shape[2]
        lhs = xs.reshape(N * Ho * Wo, C)
    else:
        cols, Ho, Wo = _extract_patches(x, k, k, stride, pad)
        lhs = jnp.concatenate(cols, axis=-1).reshape(N * Ho * Wo, k * k * C)
    res2d = None
    if residual is not None:
        res2d = residual.reshape(N * Ho * Wo, residual.shape[-1])
    out = _gemm_pallas(lhs, w, scale, bias, relu=relu, residual=res2d)
    return out.reshape(N, Ho, Wo, out.shape[-1])


def conv_bn(x, p, *, stride, pad, relu, residual=None):
    return _conv_bn_impl(x, p["w"], p["scale"], p["bias"], residual,
                         k=p["k"], stride=stride, pad=pad, relu=relu)


@jax.jit
def maxpool_3x3_s2(x):
    N, H, W, C = x.shape
    cols, Ho, Wo = _extract_patches(x, 3, 3, 2, 1, pad_value=-jnp.inf)
    M = N * Ho * Wo
    stacked = jnp.stack([c.reshape(M, C) for c in cols], axis=0)  # (9, M, C)
    TM = 512
    Mp = _round_up(M, 8)
    if Mp <= TM:
        tm = Mp
    else:
        Mp = _round_up(M, TM)
        tm = TM
    if Mp != M:
        stacked = jnp.pad(stacked, ((0, 0), (0, Mp - M), (0, 0)),
                          constant_values=-jnp.inf)
    T = stacked.shape[0]
    out = pl.pallas_call(
        _maxpool_kernel,
        out_shape=jax.ShapeDtypeStruct((Mp, C), x.dtype),
        grid=(Mp // tm, T),
        in_specs=[pl.BlockSpec((1, tm, C), lambda i, t: (t, i, 0))],
        out_specs=pl.BlockSpec((tm, C), lambda i, t: (i, 0)),
        compiler_params=pltpu.CompilerParams(
            dimension_semantics=("parallel", "arbitrary")),
    )(stacked)
    if Mp != M:
        out = out[:M]
    return out.reshape(N, Ho, Wo, C)


@jax.jit
def global_avgpool(x):
    N, H, W, C = x.shape
    x3 = x.reshape(N, H * W, C)
    tc = 256 if C % 256 == 0 else (128 if C % 128 == 0 else C)
    out = pl.pallas_call(
        _avgpool_kernel,
        out_shape=jax.ShapeDtypeStruct((N, C), jnp.float32),
        grid=(C // tc,),
        in_specs=[pl.BlockSpec((N, H * W, tc), lambda j: (0, 0, j))],
        out_specs=pl.BlockSpec((N, tc), lambda j: (0, j)),
        compiler_params=pltpu.CompilerParams(
            dimension_semantics=("parallel",)),
    )(x3)
    return out


@jax.jit
def fc_head(feat, w1, b1, w2, b2):
    B, K = feat.shape
    Hd = w1.shape[1]
    O = w2.shape[1]
    Bp = _round_up(B, 8)
    xb = feat.astype(jnp.bfloat16)
    if Bp != B:
        xb = jnp.pad(xb, ((0, Bp - B), (0, 0)))
    out = pl.pallas_call(
        _head_kernel,
        out_shape=jax.ShapeDtypeStruct((Bp, O), jnp.float32),
        grid=(1,),
        in_specs=[
            pl.BlockSpec((Bp, K), lambda i: (0, 0)),
            pl.BlockSpec((K, Hd), lambda i: (0, 0)),
            pl.BlockSpec((1, Hd), lambda i: (0, 0)),
            pl.BlockSpec((Hd, O), lambda i: (0, 0)),
            pl.BlockSpec((1, O), lambda i: (0, 0)),
        ],
        out_specs=pl.BlockSpec((Bp, O), lambda i: (0, 0)),
        compiler_params=pltpu.CompilerParams(
            dimension_semantics=("arbitrary",)),
    )(xb, w1.astype(jnp.bfloat16), b1.reshape(1, Hd).astype(jnp.float32),
      w2.astype(jnp.bfloat16), b2.reshape(1, O).astype(jnp.float32))
    return out[:B]


# --------------------------------------------------------------------------
# Network
# --------------------------------------------------------------------------

def bottleneck_forward(x, p):
    stride = p["stride"]
    if "downsample" in p:
        identity = conv_bn(x, p["downsample"], stride=stride, pad=0, relu=False)
    else:
        identity = x
    out = conv_bn(x, p["conv1"], stride=1, pad=0, relu=True)
    out = conv_bn(out, p["conv2"], stride=stride, pad=1, relu=True)
    # conv3 + BN + residual add + ReLU fused in one GEMM epilogue.
    out = conv_bn(out, p["conv3"], stride=1, pad=0, relu=True, residual=identity)
    return out


def teachernet_forward(params, x_nchw):
    x = jnp.transpose(x_nchw.astype(jnp.bfloat16), (0, 2, 3, 1))  # NCHW -> NHWC
    x = conv_bn(x, params["stem"], stride=2, pad=3, relu=True)    # 7x7/2
    x = maxpool_3x3_s2(x)
    for layer in ("layer1", "layer2", "layer3", "layer4"):
        for block in params[layer]:
            x = bottleneck_forward(x, block)
    feat = global_avgpool(x)                                      # (N, 2048) f32
    logits = fc_head(feat, params["fc1_w"], params["fc1_b"],
                     params["fc2_w"], params["fc2_b"])
    return logits


# --------------------------------------------------------------------------
# Deterministic parameter initialization (synthetic, matches module shapes)
# --------------------------------------------------------------------------

def make_conv_params(key, cin, cout, k):
    fan_in = k * k * cin
    w = jax.random.normal(key, (fan_in, cout), jnp.float32) * (2.0 / fan_in) ** 0.5
    # Eval-mode BatchNorm folded to scale/bias with init stats (mean=0, var=1, g=1, b=0).
    scale = jnp.full((cout,), 1.0 / (1.0 + EPS) ** 0.5, jnp.float32)
    bias = jnp.zeros((cout,), jnp.float32)
    return {"w": w.astype(jnp.bfloat16), "scale": scale, "bias": bias, "k": k}


def make_bottleneck(key, cin, planes, stride):
    k1, k2, k3, k4 = jax.random.split(key, 4)
    p = {
        "conv1": make_conv_params(k1, cin, planes, 1),
        "conv2": make_conv_params(k2, planes, planes, 3),
        "conv3": make_conv_params(k3, planes, planes * 4, 1),
        "stride": stride,
    }
    if stride != 1 or cin != planes * 4:
        p["downsample"] = make_conv_params(k4, cin, planes * 4, 1)
    return p


def init_teachernet_params(key):
    k_stem, k1, k2, k3, k4, k_fc1, k_fc2 = jax.random.split(key, 7)
    params = {"stem": make_conv_params(k_stem, 3, 64, 7)}
    layer_keys = {"layer1": k1, "layer2": k2, "layer3": k3, "layer4": k4}
    cfg = [("layer1", 64, 3, 1), ("layer2", 128, 4, 2),
           ("layer3", 256, 6, 2), ("layer4", 512, 3, 2)]
    cin = 64
    for name, planes, nblocks, stride in cfg:
        bkeys = jax.random.split(layer_keys[name], nblocks)
        blocks = []
        for b in range(nblocks):
            s = stride if b == 0 else 1
            blocks.append(make_bottleneck(bkeys[b], cin, planes, s))
            cin = planes * 4
        params[name] = blocks
    kw1, kb1 = jax.random.split(k_fc1)
    kw2, kb2 = jax.random.split(k_fc2)
    params["fc1_w"] = jax.random.normal(kw1, (2048, 512), jnp.float32) / 2048 ** 0.5
    params["fc1_b"] = jax.random.normal(kb1, (512,), jnp.float32) * 0.01
    params["fc2_w"] = jax.random.normal(kw2, (512, 10), jnp.float32) / 512 ** 0.5
    params["fc2_b"] = jax.random.normal(kb2, (10,), jnp.float32) * 0.01
    return params


if __name__ == "__main__":
    key = jax.random.PRNGKey(0)
    pkey, xkey = jax.random.split(key)
    params = init_teachernet_params(pkey)
    # Small input consistent with ResNet50: NCHW, 3 channels, 32x32 spatial.
    x = jax.random.normal(xkey, (2, 3, 32, 32), jnp.float32)
    logits = teachernet_forward(params, x)
    logits = jax.block_until_ready(logits)
    assert logits.shape == (2, 10), logits.shape
    assert bool(jnp.all(jnp.isfinite(logits)))
    print("KERNEL_OK")
</pallas_src>

<mosaic_0001>
module attributes {stable_mosaic.version = 11 : i64} {
  func.func @_gemm_kernel(%arg0: i32, %arg1: i32, %arg2: i32, %arg3: memref<256x256xbf16, #tpu.memory_space<vmem>>, %arg4: memref<256x64xbf16, #tpu.memory_space<vmem>>, %arg5: memref<1x64xf32, #tpu.memory_space<vmem>>, %arg6: memref<1x64xf32, #tpu.memory_space<vmem>>, %arg7: memref<256x64xbf16, #tpu.memory_space<vmem>>, %arg8: memref<256x64xf32, #tpu.memory_space<vmem>>) attributes {dimension_semantics = [#tpu.dimension_semantics<parallel>, #tpu.dimension_semantics<parallel>, #tpu.dimension_semantics<arbitrary>], iteration_bounds = array<i64: 2, 1, 1>, scalar_prefetch = 0 : i64, scratch_operands = 1 : i64, tpu.core_type = #tpu.core_type<tc>, window_params = [{transform_indices = @transform_0, window_bounds = array<i64: 256, 256>}, {transform_indices = @transform_1, window_bounds = array<i64: 256, 64>}, {transform_indices = @transform_2, window_bounds = array<i64: 1, 64>}, {transform_indices = @transform_3, window_bounds = array<i64: 1, 64>}, {transform_indices = @transform_4, window_bounds = array<i64: 256, 64>}]} {
    %c0_i32 = arith.constant 0 : i32
    %0 = arith.cmpi eq, %arg2, %c0_i32 : i32
    %1 = arith.extui %0 : i1 to i32
    %c0_i32_0 = arith.constant 0 : i32
    %2 = arith.cmpi ne, %1, %c0_i32_0 : i32
    scf.if %2 {
      %cst_10 = arith.constant 0.000000e+00 : f32
      %12 = vector.broadcast %cst_10 : f32 to vector<256x64xf32>
      %c0_11 = arith.constant 0 : index
      %c0_12 = arith.constant 0 : index
      %13 = vector.load %arg8[%c0_11, %c0_12] : memref<256x64xf32, #tpu.memory_space<vmem>>, vector<256x64xf32>
      tpu.vector_store %arg8[%c0_11, %c0_12], %12 {strides = array<i32>} : memref<256x64xf32, #tpu.memory_space<vmem>>, vector<256x64xf32>,
    } else {
    }
    %c0 = arith.constant 0 : index
    %c0_1 = arith.constant 0 : index
    %3 = vector.load %arg8[%c0, %c0_1] : memref<256x64xf32, #tpu.memory_space<vmem>>, vector<256x64xf32>
    %c0_2 = arith.constant 0 : index
    %c0_3 = arith.constant 0 : index
    %4 = vector.load %arg3[%c0_2, %c0_3] : memref<256x256xbf16, #tpu.memory_space<vmem>>, vector<256x256xbf16>
    %c0_4 = arith.constant 0 : index
    %c0_5 = arith.constant 0 : index
    %5 = vector.load %arg4[%c0_4, %c0_5] : memref<256x64xbf16, #tpu.memory_space<vmem>>, vector<256x64xbf16>
    %cst = arith.constant dense<0.000000e+00> : vector<256x64xf32>
    %6 = tpu.matmul %4, %5, %cst {dimension_numbers = #tpu.dot_dimension_numbers<[1], [0], [0], [1], [0, 0, 1, 1], [], []>} : vector<256x256xbf16>, vector<256x64xbf16>, vector<256x64xf32> -> vector<256x64xf32>
    %7 = arith.addf %3, %6 : vector<256x64xf32>
    %c0_6 = arith.constant 0 : index
    %c0_7 = arith.constant 0 : index
    %8 = vector.load %arg8[%c0_6, %c0_7] : memref<256x64xf32, #tpu.memory_space<vmem>>, vector<256x64xf32>
    tpu.vector_store %arg8[%c0_6, %c0_7], %7 {strides = array<i32>} : memref<256x64xf32, #tpu.memory_space<vmem>>, vector<256x64xf32>,
    %c0_i32_8 = arith.constant 0 : i32
    %9 = arith.cmpi eq, %arg2, %c0_i32_8 : i32
    %10 = arith.extui %9 : i1 to i32
    %c0_i32_9 = arith.constant 0 : i32
    %11 = arith.cmpi ne, %10, %c0_i32_9 : i32
    scf.if %11 {
      %c0_10 = arith.constant 0 : index
      %c0_11 = arith.constant 0 : index
      %12 = vector.load %arg8[%c0_10, %c0_11] : memref<256x64xf32, #tpu.memory_space<vmem>>, vector<256x64xf32>
      %c0_12 = arith.constant 0 : index
      %c0_13 = arith.constant 0 : index
      %13 = vector.load %arg5[%c0_12, %c0_13] : memref<1x64xf32, #tpu.memory_space<vmem>>, vector<1x64xf32>
      %14 = vector.broadcast %13 : vector<1x64xf32> to vector<256x64xf32>
      %15 = arith.mulf %12, %14 : vector<256x64xf32>
      %c0_14 = arith.constant 0 : index
      %c0_15 = arith.constant 0 : index
      %16 = vector.load %arg6[%c0_14, %c0_15] : memref<1x64xf32, #tpu.memory_space<vmem>>, vector<1x64xf32>
      %17 = vector.broadcast %16 : vector<1x64xf32> to vector<256x64xf32>
      %18 = arith.addf %15, %17 : vector<256x64xf32>
      %cst_16 = arith.constant 0.000000e+00 : f32
      %19 = vector.broadcast %cst_16 : f32 to vector<256x64xf32>
      %20 = arith.maximumf %18, %19 : vector<256x64xf32>
      %21 = arith.truncf %20 : vector<256x64xf32> to vector<256x64xbf16>
      %c0_17 = arith.constant 0 : index
      %c0_18 = arith.constant 0 : index
      %22 = vector.load %arg7[%c0_17, %c0_18] : memref<256x64xbf16, #tpu.memory_space<vmem>>, vector<256x64xbf16>
      tpu.vector_store %arg7[%c0_17, %c0_18], %21 {strides = array<i32>} : memref<256x64xbf16, #tpu.memory_space<vmem>>, vector<256x64xbf16>,
    } else {
    }
    return
  }
  func.func @transform_0(%arg0: i32, %arg1: i32, %arg2: i32) -> (i32, i32) {
    %c0_i32 = arith.constant 0 : i32
    return %arg0, %arg2 : i32, i32
  }
  func.func @transform_1(%arg0: i32, %arg1: i32, %arg2: i32) -> (i32, i32) {
    %c0_i32 = arith.constant 0 : i32
    return %arg2, %arg1 : i32, i32
  }
  func.func @transform_2(%arg0: i32, %arg1: i32, %arg2: i32) -> (i32, i32) {
    %c0_i32 = arith.constant 0 : i32
    %c0_i32_0 = arith.constant 0 : i32
    return %c0_i32, %arg1 : i32, i32
  }
  func.func @transform_3(%arg0: i32, %arg1: i32, %arg2: i32) -> (i32, i32) {
    %c0_i32 = arith.constant 0 : i32
    %c0_i32_0 = arith.constant 0 : i32
    return %c0_i32, %arg1 : i32, i32
  }
  func.func @transform_4(%arg0: i32, %arg1: i32, %arg2: i32) -> (i32, i32) {
    %c0_i32 = arith.constant 0 : i32
    return %arg0, %arg1 : i32, i32
  }
}

</mosaic_0001>

<bundles_post_ra>
// kernel: _conv_bn_impl.1
= control target key start
LH: loop header
LB: loop body
LE: loop exit
PB: predicated region body
PF: predicated region fallthrough
CT: control target
= control target key end

     0   :  { %9 = vsyncpa [#allocation4], 0  ;;  %s2257_s0 = inlined_call_operand.vmem [shape: bf16[512,256], index: 0, kind: input, shape index: {}]   ;;  %s2258_s1 = inlined_call_operand.vmem [shape: bf16[256,64], index: 1, kind: input, shape index: {}]   ;;  %s2259_s2 = inlined_call_operand.vmem [shape: f32[1,64], index: 2, kind: input, shape index: {}]   ;;  %s2260_s3 = inlined_call_operand.vmem [shape: f32[1,64], index: 3, kind: input, shape index: {}]   ;;  %s2261_s4 = inlined_call_operand.hbm [shape: bf16[512,64], index: 4, kind: output, shape index: {}]  }
   0x1   :  { %11 = vsyncpa [#allocation4 + $0x1], 0  ;;  %s1850_s15 = smov 0   ;;  %s1852_s16 = smov 0  }
   0x2   :  { %s1854_s17 = smov 0   ;;  %s1856_s18 = smov 0  }
   0x3   :  { %s1858_s19 = smov 0   ;;  %s1860_s20 = smov 0  }
   0x4 LB: > { %s1360_s21 = sadd.s32 4294967295, %s1819_s20   ;;  %s1361_s22 = sadd.s32 4294967294, %s1819_s20   ;;  %s1819_s20 = sphi %s1860_s20, %s17_s20   ;;  %s1815_s19 = sphi %s1858_s19, %s2268_s19   ;;  %s1811_s18 = sphi %s1856_s18, %s2267_s18   ;;  %s1807_s17 = sphi %s1854_s17, %s2266_s17   ;;  %s1803_s16 = sphi %s1852_s16, %s2265_s16   ;;  %s1799_s15 = sphi %s1850_s15, %s2264_s15  }
   0x5   : > { %s36_s23 = sadd.s32 1, %s1815_s19  ;;  %s153_s24 = sadd.s32 1, %s1807_s17 }
   0x6   : > { %p38_p0 = scmp.ge.s32.totalorder %s36_s23, 2  ;;  %p163_p1 = scmp.ne.s32.totalorder %s1807_s17, %s1803_s16 }
   0x7   : > { %p164_p2 = scmp.eq.s32.totalorder %s1360_s21, 1  ;;  %p169_p3 = scmp.ne.s32.totalorder %s1803_s16, %s1799_s15 }
   0x8   : > { %s2270_s23 = smov (%p38_p0, %s36_s23), 0  ;;  %p170_p5 = scmp.eq.s32.totalorder %s1361_s22, 1 }
   0x9   : > { %p1890_p4 = por %p164_p2, %p163_p1  ;;  %s148_s26 = ssub.s32 %s1815_s19, %s2270_s23 }
   0xa   : > { %p1367_p6 = scmp.ge.s32.totalorder %s1819_s20, 1  ;;  %p151_p7 = scmp.eq.s32.totalorder %s148_s26, 0 }
   0xb   : > { %p1897_p8 = por %p170_p5, %p169_p3  ;;  %p227_p9 = scmp.lt.s32.totalorder %s1819_s20, 3 }
   0xc   : > { %s1903_s28 = scalar_select %p151_p7, %s1807_s17, %s153_s24  }
   0xd   : > { %p228_p10 = pnand %p1367_p6, %p227_p9 }
   0xe   : > { %s1369_s5 = sshll.u32 (!%p228_p10), %s1811_s18, 5  ;;  %s1492_s21 = sshll.u32 (!%p228_p10), %s1811_s18, 11 }
   0xf   : > { %231 = sbr.rel (%p228_p10) target bundleno = 343 (0x157), region = 36  ;;  %p274_p11 = scmp.lt.s32.totalorder (!%p228_p10), %s1369_s5, 63 }
  0x10   : > { %s2202_s29 = scalar_lea.hbm (!%p228_p10), %s2261_s4, %s1492_s21  ;;  %s1822_s6 = smov (!%p228_p10), [#allocation3]  }
  0x11   : > { %s1747_s7 = sshll.u32 (!%p228_p10), %s1822_s6, 4  ;;  %s1748_s7 = int_to_ptr.vmem [resolvable:$false] %s1747_s7 }
  0x12   : > { %s1749_s8 = scalar_lea.vmem (!%p228_p10), %s1748_s7, 4096 }
  0x14   : > { %v1679_v0 = vld [vmem:[%s2258_s1 + $0x78] sm:$0xff]   ;;  %v1681_v2 = vld [vmem:[%s2258_s1 + $0x70] sm:$0xff]   ;;  %v1683_v4 = vld [vmem:[%s2258_s1 + $0x68] sm:$0xff]   ;;  %s2272_s5 = smov (!%p274_p11, %s1369_s5), 63  ;;  %vm305_vm0 = vcmask 523264   ;;  %v1821_v48 = vmov 0.0  }
  0x15   : > { %v1680_v1 = vld [vmem:[%s2258_s1 + $0x38] sm:$0xff]   ;;  %1493 = vmatprep.subr.bf16.mxu0 %v1679_v0  ;;  %1605 = vmatprep.subr.bf16.mxu1 %v1679_v0  ;;  %v1682_v3 = vld [vmem:[%s2258_s1 + $0x30] sm:$0xff]   ;;  %v1684_v5 = vld [vmem:[%s2258_s1 + $0x28] sm:$0xff]   ;;  %s1459_s30 = sshll.u32 %s2272_s5, 3  ;;  %306 = vst.msk [vmem:[#allocation2] sm:$0xff] %vm305_vm0, %v1821_v48  ;;  %s269_s5 = sand.u32 1, %s1803_s16  }
  0x16   : > { %1494 = vmatpush3.bf16.msra.mxu0 %v1680_v1  ;;  %1613 = vmatpush3.bf16.msra.mxu1 %v1680_v1  ;;  %v1685_v6 = vld [vmem:[%s2258_s1 + $0x60] sm:$0xff]   ;;  %v1687_v8 = vld [vmem:[%s2258_s1 + $0x58] sm:$0xff]   ;;  %s1936_s10 = scalar_lea.vmem %s2257_s0, %s1459_s30  ;;  %v1689_v10 = vld [vmem:[%s2258_s1 + $0x50] sm:$0xff]   ;;  %307 = vst.msk [vmem:[#allocation2 + $0x8] sm:$0xff] %vm305_vm0, %v1821_v48  ;;  %s2044_s13 = sshll.u32 %s269_s5, 7  ;;  %vm1189_vm1 = vcmask 519168  }
  0x17   : > { %1495 = vmatprep.subr.bf16.mxu0 %v1681_v2  ;;  %1606 = vmatprep.subr.bf16.mxu1 %v1681_v2  ;;  %v1686_v7 = vld [vmem:[%s2258_s1 + $0x20] sm:$0xff]   ;;  %v1688_v9 = vld [vmem:[%s2258_s1 + $0x18] sm:$0xff]   ;;  %v1690_v13 = vld [vmem:[%s2258_s1 + $0x10] sm:$0xff]   ;;  %308 = vst.msk [vmem:[#allocation2 + $0x10] sm:$0xff] %vm305_vm0, %v1821_v48  ;;  %s2055_s14 = scalar_lea.vmem [#allocation3], %s2044_s13  ;;  %s2212_s18 = scalar_lea.sflag [#allocation4], %s269_s5 }
  0x18   : > { %v1697_v11 = vld [vmem:[%s1936_s10 + $0x4] ss:$8 sps:$4 sm:$0xff]   ;;  %v1695_v18 = vld [vmem:[%s1936_s10] ss:$8 sps:$4 sm:$0xff]   ;;  %v1701_v20 = vld [vmem:[%s1936_s10 + $0x14] ss:$8 sps:$4 sm:$0xff]  }
  0x19   : > { %v1700_v12 = vld [vmem:[%s1936_s10 + $0x84] ss:$8 sps:$4 sm:$0xff]   ;;  %722 = vmatprep.mubr.bf16.mxu0 %v1697_v11  ;;  %v1698_v19 = vld [vmem:[%s1936_s10 + $0x80] ss:$8 sps:$4 sm:$0xff]   ;;  %v1703_v21 = vld [vmem:[%s1936_s10 + $0x94] ss:$8 sps:$4 sm:$0xff]  }
  0x1a   : > { %1496 = vmatpush3.bf16.msra.mxu0 %v1682_v3  ;;  %1614 = vmatpush3.bf16.msra.mxu1 %v1682_v3  ;;  %v1691_v14 = vld [vmem:[%s2258_s1 + $0x48] sm:$0xff]   ;;  %v1693_v16 = vld [vmem:[%s2258_s1 + $0x40] sm:$0xff]   ;;  %v1705_v22 = vld [vmem:[%s1936_s10 + $0x10] ss:$8 sps:$4 sm:$0xff]   ;;  %309 = vst.msk [vmem:[#allocation2 + $0x18] sm:$0xff] %vm305_vm0, %v1821_v48  ;;  %s1237_s22 = sshll.u32 %s2055_s14, 4  ;;  %s2204_s22 = int_to_ptr.vmem [resolvable:$true] %s1237_s22 }
  0x1b   : > { %1497 = vmatprep.subr.bf16.mxu0 %v1683_v4  ;;  %1607 = vmatprep.subr.bf16.mxu1 %v1683_v4  ;;  %v1692_v15 = vld [vmem:[%s2258_s1 + $0x8] sm:$0xff]   ;;  %v1694_v17 = vld [vmem:[%s2258_s1] sm:$0xff]   ;;  %v1706_v23 = vld [vmem:[%s1936_s10 + $0x90] ss:$8 sps:$4 sm:$0xff]   ;;  %310 = vst.msk [vmem:[#allocation2 + $0x20] sm:$0xff] %vm305_vm0, %v1821_v48  ;;  %s1743_s30 = scalar_lea.vmem %s2204_s22, 2048  ;;  %p1750_p1 = scmp.lt.s32.totalorder %s2204_s22, %s1748_s7 }
  0x1c   : > { %786 = vmatprep.mubr.bf16.mxu1 %v1700_v12  ;;  %v1707_v24 = vld [vmem:[%s1936_s10 + $0x24] ss:$8 sps:$4 sm:$0xff]   ;;  %v1711_v26 = vld [vmem:[%s1936_s10 + $0x20] ss:$8 sps:$4 sm:$0xff]   ;;  %v1713_v28 = vld [vmem:[%s1936_s10 + $0x34] ss:$8 sps:$4 sm:$0xff]   ;;  %p1744_p12 = scmp.ne.s32.totalorder %s2204_s22, %s1743_s30  ;;  %p1751_p2 = scmp.lt.s32.totalorder %s1749_s8, %s1743_s30 }
  0x1d   : > { %v1709_v25 = vld [vmem:[%s1936_s10 + $0xa4] ss:$8 sps:$4 sm:$0xff]   ;;  %v1712_v27 = vld [vmem:[%s1936_s10 + $0xa0] ss:$8 sps:$4 sm:$0xff]   ;;  %v1715_v29 = vld [vmem:[%s1936_s10 + $0xb4] ss:$8 sps:$4 sm:$0xff]  }
  0x1e   : > { %1498 = vmatpush3.bf16.msra.mxu0 %v1684_v5  ;;  %1615 = vmatpush3.bf16.msra.mxu1 %v1684_v5  ;;  %v1717_v30 = vld [vmem:[%s1936_s10 + $0x30] ss:$8 sps:$4 sm:$0xff]   ;;  %v1719_v32 = vld [vmem:[%s1936_s10 + $0x44] ss:$8 sps:$4 sm:$0xff]   ;;  %v1723_v34 = vld [vmem:[%s1936_s10 + $0x40] ss:$8 sps:$4 sm:$0xff]   ;;  %p1745_p13 = pnand %p1744_p12, %p1890_p4  ;;  %p1752_p3 = por %p1751_p2, %p1750_p1 }
  0x1f   : > { %1499 = vmatprep.subr.bf16.mxu0 %v1685_v6  ;;  %1608 = vmatprep.subr.bf16.mxu1 %v1685_v6  ;;  %v1718_v31 = vld [vmem:[%s1936_s10 + $0xb0] ss:$8 sps:$4 sm:$0xff]   ;;  %v1721_v33 = vld [vmem:[%s1936_s10 + $0xc4] ss:$8 sps:$4 sm:$0xff]   ;;  %v1724_v35 = vld [vmem:[%s1936_s10 + $0xc0] ss:$8 sps:$4 sm:$0xff]  }
  0x20   : > { %v1725_v36 = vld [vmem:[%s1936_s10 + $0x54] ss:$8 sps:$4 sm:$0xff]   ;;  %v1729_v38 = vld [vmem:[%s1936_s10 + $0x50] ss:$8 sps:$4 sm:$0xff]   ;;  %v1731_v40 = vld [vmem:[%s1936_s10 + $0x64] ss:$8 sps:$4 sm:$0xff]   ;;  %p1746_p0 = pneg %p1745_p13 }
  0x21   : > { %v1727_v37 = vld [vmem:[%s1936_s10 + $0xd4] ss:$8 sps:$4 sm:$0xff]   ;;  %v1730_v39 = vld [vmem:[%s1936_s10 + $0xd0] ss:$8 sps:$4 sm:$0xff]   ;;  %v1733_v41 = vld [vmem:[%s1936_s10 + $0xe4] ss:$8 sps:$4 sm:$0xff]  }
  0x22   : > { %1500 = vmatpush3.bf16.msra.mxu0 %v1686_v7  ;;  %1616 = vmatpush3.bf16.msra.mxu1 %v1686_v7  ;;  %v1735_v42 = vld [vmem:[%s1936_s10 + $0x60] ss:$8 sps:$4 sm:$0xff]   ;;  %v1737_v44 = vld [vmem:[%s1936_s10 + $0x74] ss:$8 sps:$4 sm:$0xff]   ;;  %v1741_v46 = vld [vmem:[%s1936_s10 + $0x70] ss:$8 sps:$4 sm:$0xff]   ;;  %p1753_p5 = pnand %p1752_p3, %p1746_p0 }
  0x23   : > { %1501 = vmatprep.subr.bf16.mxu0 %v1687_v8  ;;  %1609 = vmatprep.subr.bf16.mxu1 %v1687_v8  ;;  %v1736_v43 = vld [vmem:[%s1936_s10 + $0xe0] ss:$8 sps:$4 sm:$0xff]   ;;  %v1739_v45 = vld [vmem:[%s1936_s10 + $0xf4] ss:$8 sps:$4 sm:$0xff]   ;;  %v1742_v47 = vld [vmem:[%s1936_s10 + $0xf0] ss:$8 sps:$4 sm:$0xff]  }
  0x24   : > { %311 = vst.msk [vmem:[#allocation2 + $0x28] sm:$0xff] %vm305_vm0, %v1821_v48  ;;  %312 = vst.msk [vmem:[#allocation2 + $0x30] sm:$0xff] %vm305_vm0, %v1821_v48  ;;  %v338_v51 = vld [vmem:[#allocation2] sm:$0xff]  ;;  %v339_v61 = vld [vmem:[#allocation2 + $0x8] sm:$0xff] }
  0x25   : > { %313 = vst.msk [vmem:[#allocation2 + $0x38] sm:$0xff] %vm305_vm0, %v1821_v48  ;;  %314 = vst.msk [vmem:[#allocation2 + $0x40] sm:$0xff] %vm305_vm0, %v1821_v48  ;;  %v340_v7 = vld [vmem:[#allocation2 + $0x10] sm:$0xff] }
  0x26   : > { %1502 = vmatpush3.bf16.msra.mxu0 %v1688_v9  ;;  %1617 = vmatpush3.bf16.msra.mxu1 %v1688_v9  ;;  %315 = vst.msk [vmem:[#allocation2 + $0x48] sm:$0xff] %vm305_vm0, %v1821_v48  ;;  %316 = vst.msk [vmem:[#allocation2 + $0x50] sm:$0xff] %vm305_vm0, %v1821_v48 }
  0x27   : > { %1503 = vmatprep.subr.bf16.mxu0 %v1689_v10  ;;  %1610 = vmatprep.subr.bf16.mxu1 %v1689_v10  ;;  %317 = vst.msk [vmem:[#allocation2 + $0x58] sm:$0xff] %vm305_vm0, %v1821_v48  ;;  %318 = vst.msk [vmem:[#allocation2 + $0x60] sm:$0xff] %vm305_vm0, %v1821_v48 }
  0x28   : > { %319 = vst.msk [vmem:[#allocation2 + $0x68] sm:$0xff] %vm305_vm0, %v1821_v48  ;;  %320 = vst.msk [vmem:[#allocation2 + $0x70] sm:$0xff] %vm305_vm0, %v1821_v48 }
  0x29   : > { %321 = vst.msk [vmem:[#allocation2 + $0x78] sm:$0xff] %vm305_vm0, %v1821_v48  ;;  %322 = vst.msk [vmem:[#allocation2 + $0x80] sm:$0xff] %vm305_vm0, %v1821_v48 }
  0x2a   : > { %1504 = vmatpush3.bf16.msra.mxu0 %v1690_v13  ;;  %1618 = vmatpush3.bf16.msra.mxu1 %v1690_v13  ;;  %323 = vst.msk [vmem:[#allocation2 + $0x88] sm:$0xff] %vm305_vm0, %v1821_v48  ;;  %324 = vst.msk [vmem:[#allocation2 + $0x90] sm:$0xff] %vm305_vm0, %v1821_v48  ;;  %v2030_v13 = vld [vmem:[%s2259_s2] ss:$0 sm:$0xff] }
  0x2b   : > { %1505 = vmatprep.subr.bf16.mxu0 %v1691_v14  ;;  %1611 = vmatprep.subr.bf16.mxu1 %v1691_v14  ;;  %325 = vst.msk [vmem:[#allocation2 + $0x98] sm:$0xff] %vm305_vm0, %v1821_v48  ;;  %326 = vst.msk [vmem:[#allocation2 + $0xa0] sm:$0xff] %vm305_vm0, %v1821_v48 }
  0x2c   : > { %327 = vst.msk [vmem:[#allocation2 + $0xa8] sm:$0xff] %vm305_vm0, %v1821_v48  ;;  %328 = vst.msk [vmem:[#allocation2 + $0xb0] sm:$0xff] %vm305_vm0, %v1821_v48 }
  0x2d   : > { %329 = vst.msk [vmem:[#allocation2 + $0xb8] sm:$0xff] %vm305_vm0, %v1821_v48  ;;  %330 = vst.msk [vmem:[#allocation2 + $0xc0] sm:$0xff] %vm305_vm0, %v1821_v48 }
  0x2e   : > { %1506 = vmatpush3.bf16.msra.mxu0 %v1692_v15  ;;  %1619 = vmatpush3.bf16.msra.mxu1 %v1692_v15  ;;  %331 = vst.msk [vmem:[#allocation2 + $0xc8] sm:$0xff] %vm305_vm0, %v1821_v48  ;;  %332 = vst.msk [vmem:[#allocation2 + $0xd0] sm:$0xff] %vm305_vm0, %v1821_v48 }
  0x2f   : > { %1507 = vmatprep.subr.bf16.mxu0 %v1693_v16  ;;  %1612 = vmatprep.subr.bf16.mxu1 %v1693_v16  ;;  %333 = vst.msk [vmem:[#allocation2 + $0xd8] sm:$0xff] %vm305_vm0, %v1821_v48  ;;  %334 = vst.msk [vmem:[#allocation2 + $0xe0] sm:$0xff] %vm305_vm0, %v1821_v48  ;;  %v2035_v16 = vld [vmem:[%s2260_s3] ss:$0 sm:$0xff] }
  0x30   : > { %335 = vst.msk [vmem:[#allocation2 + $0xe8] sm:$0xff] %vm305_vm0, %v1821_v48  ;;  %336 = vst.msk [vmem:[#allocation2 + $0xf0] sm:$0xff] %vm305_vm0, %v1821_v48  ;;  %v354_v53 = vld [vmem:[#allocation2 + $0x80] sm:$0xff] }
  0x31   : > { %337 = vst.msk [vmem:[#allocation2 + $0xf8] sm:$0xff] %vm305_vm0, %v1821_v48  ;;  %v355_v63 = vld [vmem:[#allocation2 + $0x88] sm:$0xff]  ;;  %v356_v9 = vld [vmem:[#allocation2 + $0x90] sm:$0xff] }
  0x32   : > { %1508 = vmatpush3.bf16.msra.mxu0 %v1694_v17  ;;  %1620 = vmatpush3.bf16.msra.mxu1 %v1694_v17 }
  0x35   : > { %723 = vmatmul.mubr.bf16.vlgmr.msra.gmra.mxu0 %v1695_v18  ;;  %787 = vmatmul.mubr.bf16.vlgmr.msra.gmra.mxu1 %v1698_v19  ;;  %v341_v19 = vld [vmem:[#allocation2 + $0x18] sm:$0xff] }
  0x36   : > { %730 = vmatprep.mubr.bf16.mxu0 %v1701_v20  ;;  %794 = vmatprep.mubr.bf16.mxu1 %v1703_v21 }
  0x3d   : > { %731 = vmatmul.mubr.bf16.gmra.mxu0 %v1705_v22  ;;  %795 = vmatmul.mubr.bf16.gmra.mxu1 %v1706_v23  ;;  %v357_v23 = vld [vmem:[#allocation2 + $0x98] sm:$0xff] }
  0x3e   : > { %738 = vmatprep.mubr.bf16.mxu0 %v1707_v24  ;;  %802 = vmatprep.mubr.bf16.mxu1 %v1709_v25 }
  0x45   : > { %739 = vmatmul.mubr.bf16.gmra.mxu0 %v1711_v26  ;;  %803 = vmatmul.mubr.bf16.gmra.mxu1 %v1712_v27 }
  0x46   : > { %746 = vmatprep.mubr.bf16.mxu0 %v1713_v28  ;;  %810 = vmatprep.mubr.bf16.mxu1 %v1715_v29 }
  0x4d   : > { %747 = vmatmul.mubr.bf16.gmra.mxu0 %v1717_v30  ;;  %811 = vmatmul.mubr.bf16.gmra.mxu1 %v1718_v31 }
  0x4e   : > { %754 = vmatprep.mubr.bf16.mxu0 %v1719_v32  ;;  %818 = vmatprep.mubr.bf16.mxu1 %v1721_v33 }
  0x55   : > { %755 = vmatmul.mubr.bf16.gmra.mxu0 %v1723_v34  ;;  %819 = vmatmul.mubr.bf16.gmra.mxu1 %v1724_v35 }
  0x56   : > { %762 = vmatprep.mubr.bf16.mxu0 %v1725_v36  ;;  %826 = vmatprep.mubr.bf16.mxu1 %v1727_v37 }
  0x5d   : > { %763 = vmatmul.mubr.bf16.gmra.mxu0 %v1729_v38  ;;  %827 = vmatmul.mubr.bf16.gmra.mxu1 %v1730_v39 }
  0x5e   : > { %770 = vmatprep.mubr.bf16.mxu0 %v1731_v40  ;;  %834 = vmatprep.mubr.bf16.mxu1 %v1733_v41 }
  0x65   : > { %771 = vmatmul.mubr.bf16.gmra.mxu0 %v1735_v42  ;;  %835 = vmatmul.mubr.bf16.gmra.mxu1 %v1736_v43  ;;  %v342_v43 = vld [vmem:[#allocation2 + $0x20] sm:$0xff] }
  0x66   : > { %778 = vmatprep.mubr.bf16.mxu0 %v1737_v44  ;;  %842 = vmatprep.mubr.bf16.mxu1 %v1739_v45  ;;  %v358_v44 = vld [vmem:[#allocation2 + $0xa0] sm:$0xff] }
  0x6d   : > { %779 = vmatmul.mubr.bf16.gmra.mxu0 %v1741_v46  ;;  %843 = vmatmul.mubr.bf16.gmra.mxu1 %v1742_v47 }
  0xf5   : > { %v1509_v49 = vpop.f32.mrf.mxu0  ;;  %v1557_v50 = vpop.f32.mrf.mxu1 }
  0xf7   : > { %v1510_v52 = vpop.f32.mrf.mxu0  ;;  %v1558_v54 = vpop.f32.mrf.mxu1 }
  0xf8   : > { %v1511_v55 = vadd.f32 %v1510_v52, %v1509_v49  ;;  %v1559_v56 = vadd.f32 %v1558_v54, %v1557_v50 }
  0xf9   : > { %v1512_v57 = vpop.f32.mrf.mxu0  ;;  %v1560_v58 = vpop.f32.mrf.mxu1 }
  0xfa   : > { %v851_v59 = vadd.f32 %v1511_v55, %v338_v51  ;;  %v867_v60 = vadd.f32 %v1559_v56, %v354_v53 }
  0xfb   : > { %v1513_v62 = vpop.f32.mrf.mxu0  ;;  %v1561_v0 = vpop.f32.mrf.mxu1 }
  0xfc   : > { %884 = vst.msk [vmem:[#allocation2] sm:$0xff] %vm305_vm0, %v851_v59  ;;  %900 = vst.msk [vmem:[#allocation2 + $0x80] sm:$0xff] %vm305_vm0, %v867_v60  ;;  %v1514_v1 = vadd.f32 %v1513_v62, %v1512_v57  ;;  %v1562_v2 = vadd.f32 %v1561_v0, %v1560_v58  ;;  %v359_v0 = vld [vmem:[#allocation2 + $0xa8] sm:$0xff] }
  0xfd   : > { %v1515_v3 = vpop.f32.mrf.mxu0  ;;  %v1563_v4 = vpop.f32.mrf.mxu1 }
  0xfe   : > { %v852_v5 = vadd.f32 %v1514_v1, %v339_v61  ;;  %v868_v6 = vadd.f32 %v1562_v2, %v355_v63  ;;  %v343_v63 = vld [vmem:[#allocation2 + $0x28] sm:$0xff] }
  0xff   : > { %v1516_v8 = vpop.f32.mrf.mxu0  ;;  %v1564_v10 = vpop.f32.mrf.mxu1 }
 0x100   : > { %885 = vst.msk [vmem:[#allocation2 + $0x8] sm:$0xff] %vm305_vm0, %v852_v5  ;;  %901 = vst.msk [vmem:[#allocation2 + $0x88] sm:$0xff] %vm305_vm0, %v868_v6  ;;  %v1517_v11 = vadd.f32 %v1516_v8, %v1515_v3  ;;  %v1565_v12 = vadd.f32 %v1564_v10, %v1563_v4 }
 0x101   : > { %v1518_v14 = vpop.f32.mrf.mxu0  ;;  %v1566_v15 = vpop.f32.mrf.mxu1 }
 0x102   : > { %v853_v17 = vadd.f32 %v1517_v11, %v340_v7  ;;  %v869_v18 = vadd.f32 %v1565_v12, %v356_v9 }
 0x103   : > { %v919_v20 = vld [vmem:[#allocation2] sm:$0xff]  ;;  %v1519_v22 = vpop.f32.mrf.mxu0  ;;  %v1567_v24 = vpop.f32.mrf.mxu1 }
 0x104   : > { %v935_v21 = vld [vmem:[#allocation2 + $0x80] sm:$0xff]  ;;  %v958_v25 = vmul.f32 %v2030_v13, %v919_v20  ;;  %886 = vst.msk [vmem:[#allocation2 + $0x10] sm:$0xff] %vm305_vm0, %v853_v17  ;;  %902 = vst.msk [vmem:[#allocation2 + $0x90] sm:$0xff] %vm305_vm0, %v869_v18  ;;  %v1520_v27 = vadd.f32 %v1519_v22, %v1518_v14  ;;  %v1568_v28 = vadd.f32 %v1567_v24, %v1566_v15  ;;  %v360_v22 = vld [vmem:[#allocation2 + $0xb0] sm:$0xff] }
 0x105   : > { %v974_v26 = vmul.f32 %v2030_v13, %v935_v21  ;;  %v1521_v29 = vpop.f32.mrf.mxu0  ;;  %v1569_v30 = vpop.f32.mrf.mxu1  ;;  %v344_v21 = vld [vmem:[#allocation2 + $0x30] sm:$0xff] }
 0x106   : > { %v997_v31 = vadd.f32 %v2035_v16, %v958_v25  ;;  %v854_v33 = vadd.f32 %v1520_v27, %v341_v19  ;;  %v870_v34 = vadd.f32 %v1568_v28, %v357_v23 }
 0x107   : > { %v1013_v32 = vadd.f32 %v2035_v16, %v974_v26  ;;  %v920_v35 = vld [vmem:[#allocation2 + $0x8] sm:$0xff]  ;;  %v1522_v37 = vpop.f32.mrf.mxu0  ;;  %v1570_v38 = vpop.f32.mrf.mxu1 }
 0x108   : > { %v936_v36 = vld [vmem:[#allocation2 + $0x88] sm:$0xff]  ;;  %v1029_v39 = vmax.f32 %v997_v31, 0.0  ;;  %v959_v41 = vmul.f32 %v2030_v13, %v920_v35  ;;  %887 = vst.msk [vmem:[#allocation2 + $0x18] sm:$0xff] %vm305_vm0, %v854_v33  ;;  %903 = vst.msk [vmem:[#allocation2 + $0x98] sm:$0xff] %vm305_vm0, %v870_v34  ;;  %v1523_v45 = vadd.f32 %v1522_v37, %v1521_v29  ;;  %v1571_v46 = vadd.f32 %v1570_v38, %v1569_v30  ;;  %v345_v33 = vld [vmem:[#allocation2 + $0x38] sm:$0xff] }
 0x109   : > { %v1045_v40 = vmax.f32 %v1013_v32, 0.0  ;;  %v975_v42 = vmul.f32 %v2030_v13, %v936_v36  ;;  %v1524_v47 = vpop.f32.mrf.mxu0  ;;  %v1572_v48 = vpop.f32.mrf.mxu1  ;;  %v361_v35 = vld [vmem:[#allocation2 + $0xb8] sm:$0xff] }
 0x10a   : > { %v1460_v49 = vpack.c.bf16 %v1029_v39, %v1029_v39  ;;  %v998_v51 = vadd.f32 %v2035_v16, %v959_v41  ;;  %v855_v55 = vadd.f32 %v1523_v45, %v342_v43  ;;  %v871_v56 = vadd.f32 %v1571_v46, %v358_v44 }
 0x10b   : > { %v1476_v50 = vpack.c.bf16 %v1045_v40, %v1045_v40  ;;  %v1014_v52 = vadd.f32 %v2035_v16, %v975_v42  ;;  %v921_v53 = vld [vmem:[#allocation2 + $0x10] sm:$0xff]  ;;  %v1525_v57 = vpop.f32.mrf.mxu0  ;;  %v1573_v58 = vpop.f32.mrf.mxu1 }
 0x10c   : > { %v937_v54 = vld [vmem:[#allocation2 + $0x90] sm:$0xff]  ;;  %1190 = vst.msk [vmem:[%s2055_s14] sm:$0xf] %vm1189_vm1, %v1460_v49  ;;  %v1030_v59 = vmax.f32 %v998_v51, 0.0  ;;  %v960_v61 = vmul.f32 %v2030_v13, %v921_v53  ;;  %v1526_v1 = vadd.f32 %v1525_v57, %v1524_v47  ;;  %v1574_v2 = vadd.f32 %v1573_v58, %v1572_v48  ;;  %v346_v53 = vld [vmem:[#allocation2 + $0x40] sm:$0xff] }
 0x10d   : > { %1206 = vst.msk [vmem:[%s2055_s14 + $0x40] sm:$0xf] %vm1189_vm1, %v1476_v50  ;;  %v1046_v60 = vmax.f32 %v1014_v52, 0.0  ;;  %v976_v62 = vmul.f32 %v2030_v13, %v937_v54  ;;  %v1527_v3 = vpop.f32.mrf.mxu0  ;;  %v1575_v4 = vpop.f32.mrf.mxu1 }
 0x10e   : > { %888 = vst.msk [vmem:[#allocation2 + $0x20] sm:$0xff] %vm305_vm0, %v855_v55  ;;  %904 = vst.msk [vmem:[#allocation2 + $0xa0] sm:$0xff] %vm305_vm0, %v871_v56  ;;  %v1461_v5 = vpack.c.bf16 %v1030_v59, %v1030_v59  ;;  %v999_v7 = vadd.f32 %v2035_v16, %v960_v61  ;;  %v856_v11 = vadd.f32 %v1526_v1, %v343_v63  ;;  %v362_v55 = vld [vmem:[#allocation2 + $0xc0] sm:$0xff] }
 0x10f   : > { %v1477_v6 = vpack.c.bf16 %v1046_v60, %v1046_v60  ;;  %v1015_v8 = vadd.f32 %v2035_v16, %v976_v62  ;;  %v922_v9 = vld [vmem:[#allocation2 + $0x18] sm:$0xff]  ;;  %v872_v12 = vadd.f32 %v1574_v2, %v359_v0  ;;  %v1528_v14 = vpop.f32.mrf.mxu0  ;;  %v1576_v15 = vpop.f32.mrf.mxu1 }
 0x110   : > { %v938_v10 = vld [vmem:[#allocation2 + $0x98] sm:$0xff]  ;;  %1191 = vst.msk [vmem:[%s2055_s14 + $0x4] sm:$0xf] %vm1189_vm1, %v1461_v5  ;;  %v1031_v17 = vmax.f32 %v999_v7, 0.0  ;;  %v961_v19 = vmul.f32 %v2030_v13, %v922_v9  ;;  %v1529_v23 = vadd.f32 %v1528_v14, %v1527_v3  ;;  %v1577_v24 = vadd.f32 %v1576_v15, %v1575_v4  ;;  %v347_v9 = vld [vmem:[#allocation2 + $0x48] sm:$0xff] }
 0x111   : > { %1207 = vst.msk [vmem:[%s2055_s14 + $0x44] sm:$0xf] %vm1189_vm1, %v1477_v6  ;;  %v1047_v18 = vmax.f32 %v1015_v8, 0.0  ;;  %v977_v20 = vmul.f32 %v2030_v13, %v938_v10  ;;  %v1530_v25 = vpop.f32.mrf.mxu0  ;;  %v1578_v26 = vpop.f32.mrf.mxu1 }
 0x112   : > { %889 = vst.msk [vmem:[#allocation2 + $0x28] sm:$0xff] %vm305_vm0, %v856_v11  ;;  %905 = vst.msk [vmem:[#allocation2 + $0xa8] sm:$0xff] %vm305_vm0, %v872_v12  ;;  %v1462_v27 = vpack.c.bf16 %v1031_v17, %v1031_v17  ;;  %v1000_v29 = vadd.f32 %v2035_v16, %v961_v19  ;;  %v857_v31 = vadd.f32 %v1529_v23, %v344_v21  ;;  %v363_v11 = vld [vmem:[#allocation2 + $0xc8] sm:$0xff] }
 0x113   : > { %v1478_v28 = vpack.c.bf16 %v1047_v18, %v1047_v18  ;;  %v1016_v30 = vadd.f32 %v2035_v16, %v977_v20  ;;  %v873_v32 = vadd.f32 %v1577_v24, %v360_v22  ;;  %v1531_v34 = vpop.f32.mrf.mxu0  ;;  %v1579_v36 = vpop.f32.mrf.mxu1 }
 0x114   : > { %1192 = vst.msk [vmem:[%s2055_s14 + $0x8] sm:$0xf] %vm1189_vm1, %v1462_v27  ;;  %v1032_v37 = vmax.f32 %v1000_v29, 0.0  ;;  %v1532_v41 = vadd.f32 %v1531_v34, %v1530_v25  ;;  %v1580_v42 = vadd.f32 %v1579_v36, %v1578_v26  ;;  %v348_v27 = vld [vmem:[#allocation2 + $0x50] sm:$0xff] }
 0x115   : > { %1208 = vst.msk [vmem:[%s2055_s14 + $0x48] sm:$0xf] %vm1189_vm1, %v1478_v28  ;;  %v1048_v38 = vmax.f32 %v1016_v30, 0.0  ;;  %v923_v39 = vld [vmem:[#allocation2 + $0x20] sm:$0xff]  ;;  %v1533_v45 = vpop.f32.mrf.mxu0  ;;  %v1581_v46 = vpop.f32.mrf.mxu1 }
 0x116   : > { %v939_v40 = vld [vmem:[#allocation2 + $0xa0] sm:$0xff]  ;;  %v962_v43 = vmul.f32 %v2030_v13, %v923_v39  ;;  %890 = vst.msk [vmem:[#allocation2 + $0x30] sm:$0xff] %vm305_vm0, %v857_v31  ;;  %906 = vst.msk [vmem:[#allocation2 + $0xb0] sm:$0xff] %vm305_vm0, %v873_v32  ;;  %v1463_v47 = vpack.c.bf16 %v1032_v37, %v1032_v37  ;;  %v858_v49 = vadd.f32 %v1532_v41, %v345_v33 }
 0x117   : > { %v978_v44 = vmul.f32 %v2030_v13, %v939_v40  ;;  %v1479_v48 = vpack.c.bf16 %v1048_v38, %v1048_v38  ;;  %v874_v50 = vadd.f32 %v1580_v42, %v361_v35  ;;  %v1534_v54 = vpop.f32.mrf.mxu0  ;;  %v1582_v56 = vpop.f32.mrf.mxu1  ;;  %v364_v35 = vld [vmem:[#allocation2 + $0xd0] sm:$0xff] }
 0x118   : > { %v1001_v51 = vadd.f32 %v2035_v16, %v962_v43  ;;  %1193 = vst.msk [vmem:[%s2055_s14 + $0xc] sm:$0xf] %vm1189_vm1, %v1463_v47  ;;  %v1535_v59 = vadd.f32 %v1534_v54, %v1533_v45  ;;  %v1583_v60 = vadd.f32 %v1582_v56, %v1581_v46 }
 0x119   : > { %v1017_v52 = vadd.f32 %v2035_v16, %v978_v44  ;;  %1209 = vst.msk [vmem:[%s2055_s14 + $0x4c] sm:$0xf] %vm1189_vm1, %v1479_v48  ;;  %v924_v57 = vld [vmem:[#allocation2 + $0x28] sm:$0xff]  ;;  %v1536_v1 = vpop.f32.mrf.mxu0  ;;  %v1584_v2 = vpop.f32.mrf.mxu1 }
 0x11a   : > { %v940_v58 = vld [vmem:[#allocation2 + $0xa8] sm:$0xff]  ;;  %891 = vst.msk [vmem:[#allocation2 + $0x38] sm:$0xff] %vm305_vm0, %v858_v49  ;;  %907 = vst.msk [vmem:[#allocation2 + $0xb8] sm:$0xff] %vm305_vm0, %v874_v50  ;;  %v1033_v61 = vmax.f32 %v1001_v51, 0.0  ;;  %v963_v63 = vmul.f32 %v2030_v13, %v924_v57  ;;  %v859_v3 = vadd.f32 %v1535_v59, %v346_v53  ;;  %v875_v4 = vadd.f32 %v1583_v60, %v362_v55  ;;  %v349_v59 = vld [vmem:[#allocation2 + $0x58] sm:$0xff] }
 0x11b   : > { %v1049_v62 = vmax.f32 %v1017_v52, 0.0  ;;  %v979_v0 = vmul.f32 %v2030_v13, %v940_v58  ;;  %v1537_v10 = vpop.f32.mrf.mxu0  ;;  %v1585_v12 = vpop.f32.mrf.mxu1  ;;  %v365_v60 = vld [vmem:[#allocation2 + $0xd8] sm:$0xff] }
 0x11c   : > { %v1464_v5 = vpack.c.bf16 %v1033_v61, %v1033_v61  ;;  %v1002_v7 = vadd.f32 %v2035_v16, %v963_v63  ;;  %892 = vst.msk [vmem:[#allocation2 + $0x40] sm:$0xff] %vm305_vm0, %v859_v3  ;;  %908 = vst.msk [vmem:[#allocation2 + $0xc0] sm:$0xff] %vm305_vm0, %v875_v4  ;;  %v1538_v17 = vadd.f32 %v1537_v10, %v1536_v1 }
 0x11d   : > { %v1480_v6 = vpack.c.bf16 %v1049_v62, %v1049_v62  ;;  %v1018_v8 = vadd.f32 %v2035_v16, %v979_v0  ;;  %v925_v14 = vld [vmem:[#allocation2 + $0x30] sm:$0xff]  ;;  %v1586_v18 = vadd.f32 %v1585_v12, %v1584_v2  ;;  %v1539_v23 = vpop.f32.mrf.mxu0  ;;  %v1587_v24 = vpop.f32.mrf.mxu1 }
 0x11e   : > { %v941_v15 = vld [vmem:[#allocation2 + $0xb0] sm:$0xff]  ;;  %1194 = vst.msk [vmem:[%s2055_s14 + $0x10] sm:$0xf] %vm1189_vm1, %v1464_v5  ;;  %v1034_v19 = vmax.f32 %v1002_v7, 0.0  ;;  %v964_v21 = vmul.f32 %v2030_v13, %v925_v14  ;;  %v860_v25 = vadd.f32 %v1538_v17, %v347_v9  ;;  %v350_v17 = vld [vmem:[#allocation2 + $0x60] sm:$0xff] }
 0x11f   : > { %1210 = vst.msk [vmem:[%s2055_s14 + $0x50] sm:$0xf] %vm1189_vm1, %v1480_v6  ;;  %v1050_v20 = vmax.f32 %v1018_v8, 0.0  ;;  %v980_v22 = vmul.f32 %v2030_v13, %v941_v15  ;;  %v876_v26 = vadd.f32 %v1586_v18, %v363_v11  ;;  %v1540_v34 = vpop.f32.mrf.mxu0  ;;  %v1588_v36 = vpop.f32.mrf.mxu1  ;;  %v366_v18 = vld [vmem:[#allocation2 + $0xe0] sm:$0xff] }
 0x120   : > { %v1465_v28 = vpack.c.bf16 %v1034_v19, %v1034_v19  ;;  %v1003_v30 = vadd.f32 %v2035_v16, %v964_v21  ;;  %893 = vst.msk [vmem:[#allocation2 + $0x48] sm:$0xff] %vm305_vm0, %v860_v25  ;;  %v1541_v39 = vadd.f32 %v1540_v34, %v1539_v23  ;;  %v1589_v40 = vadd.f32 %v1588_v36, %v1587_v24 }
 0x121   : > { %v1481_v29 = vpack.c.bf16 %v1050_v20, %v1050_v20  ;;  %v1019_v31 = vadd.f32 %v2035_v16, %v980_v22  ;;  %v926_v32 = vld [vmem:[#allocation2 + $0x38] sm:$0xff]  ;;  %909 = vst.msk [vmem:[#allocation2 + $0xc8] sm:$0xff] %vm305_vm0, %v876_v26  ;;  %v1542_v43 = vpop.f32.mrf.mxu0  ;;  %v1590_v44 = vpop.f32.mrf.mxu1 }
 0x122   : > { %v942_v33 = vld [vmem:[#allocation2 + $0xb8] sm:$0xff]  ;;  %v965_v37 = vmul.f32 %v2030_v13, %v926_v32  ;;  %1195 = vst.msk [vmem:[%s2055_s14 + $0x14] sm:$0xf] %vm1189_vm1, %v1465_v28  ;;  %v1035_v41 = vmax.f32 %v1003_v30, 0.0  ;;  %v861_v47 = vadd.f32 %v1541_v39, %v348_v27  ;;  %v877_v48 = vadd.f32 %v1589_v40, %v364_v35 }
 0x123   : > { %v981_v38 = vmul.f32 %v2030_v13, %v942_v33  ;;  %1211 = vst.msk [vmem:[%s2055_s14 + $0x54] sm:$0xf] %vm1189_vm1, %v1481_v29  ;;  %v1051_v42 = vmax.f32 %v1019_v31, 0.0  ;;  %v927_v51 = vld [vmem:[#allocation2 + $0x40] sm:$0xff]  ;;  %v1543_v53 = vpop.f32.mrf.mxu0  ;;  %v1591_v54 = vpop.f32.mrf.mxu1 }
 0x124   : > { %v1004_v45 = vadd.f32 %v2035_v16, %v965_v37  ;;  %v1466_v49 = vpack.c.bf16 %v1035_v41, %v1035_v41  ;;  %v943_v52 = vld [vmem:[#allocation2 + $0xc0] sm:$0xff]  ;;  %v966_v57 = vmul.f32 %v2030_v13, %v927_v51  ;;  %894 = vst.msk [vmem:[#allocation2 + $0x50] sm:$0xff] %vm305_vm0, %v861_v47  ;;  %910 = vst.msk [vmem:[#allocation2 + $0xd0] sm:$0xff] %vm305_vm0, %v877_v48  ;;  %v351_v37 = vld [vmem:[#allocation2 + $0x68] sm:$0xff] }
 0x125   : > { %v1020_v46 = vadd.f32 %v2035_v16, %v981_v38  ;;  %v1482_v50 = vpack.c.bf16 %v1051_v42, %v1051_v42  ;;  %v982_v58 = vmul.f32 %v2030_v13, %v943_v52  ;;  %v1544_v61 = vadd.f32 %v1543_v53, %v1542_v43  ;;  %v1545_v63 = vpop.f32.mrf.mxu0  ;;  %v1593_v0 = vpop.f32.mrf.mxu1  ;;  %v367_v38 = vld [vmem:[#allocation2 + $0xe8] sm:$0xff]  ;;  %v368_v51 = vld [vmem:[#allocation2 + $0xf0] sm:$0xff] }
 0x126   : > { %v1036_v55 = vmax.f32 %v1004_v45, 0.0  ;;  %1196 = vst.msk [vmem:[%s2055_s14 + $0x18] sm:$0xf] %vm1189_vm1, %v1466_v49  ;;  %v1592_v62 = vadd.f32 %v1591_v54, %v1590_v44  ;;  %v1005_v3 = vadd.f32 %v2035_v16, %v966_v57  ;;  %v352_v49 = vld [vmem:[#allocation2 + $0x70] sm:$0xff] }
 0x127   : > { %v1052_v56 = vmax.f32 %v1020_v46, 0.0  ;;  %1212 = vst.msk [vmem:[%s2055_s14 + $0x58] sm:$0xf] %vm1189_vm1, %v1482_v50  ;;  %v1021_v4 = vadd.f32 %v2035_v16, %v982_v58  ;;  %v928_v5 = vld [vmem:[#allocation2 + $0x48] sm:$0xff]  ;;  %v862_v7 = vadd.f32 %v1544_v61, %v349_v59  ;;  %v1546_v9 = vpop.f32.mrf.mxu0  ;;  %v1594_v10 = vpop.f32.mrf.mxu1 }
 0x128   : > { %v1467_v1 = vpack.c.bf16 %v1036_v55, %v1036_v55  ;;  %v944_v6 = vld [vmem:[#allocation2 + $0xc8] sm:$0xff]  ;;  %v878_v8 = vadd.f32 %v1592_v62, %v365_v60  ;;  %v1037_v11 = vmax.f32 %v1005_v3, 0.0  ;;  %v967_v14 = vmul.f32 %v2030_v13, %v928_v5  ;;  %v353_v5 = vld [vmem:[#allocation2 + $0x78] sm:$0xff] }
 0x129   : > { %v1483_v2 = vpack.c.bf16 %v1052_v56, %v1052_v56  ;;  %v1053_v12 = vmax.f32 %v1021_v4, 0.0  ;;  %v983_v15 = vmul.f32 %v2030_v13, %v944_v6  ;;  %895 = vst.msk [vmem:[#allocation2 + $0x58] sm:$0xff] %vm305_vm0, %v862_v7  ;;  %v1547_v19 = vadd.f32 %v1546_v9, %v1545_v63  ;;  %v1548_v21 = vpop.f32.mrf.mxu0  ;;  %v1596_v22 = vpop.f32.mrf.mxu1  ;;  %v369_v7 = vld [vmem:[#allocation2 + $0xf8] sm:$0xff] }
 0x12a   : > { %1197 = vst.msk [vmem:[%s2055_s14 + $0x1c] sm:$0xf] %vm1189_vm1, %v1467_v1  ;;  %v1595_v20 = vadd.f32 %v1594_v10, %v1593_v0  ;;  %v1468_v23 = vpack.c.bf16 %v1037_v11, %v1037_v11  ;;  %v1006_v25 = vadd.f32 %v2035_v16, %v967_v14 }
 0x12b   : > { %1213 = vst.msk [vmem:[%s2055_s14 + $0x5c] sm:$0xf] %vm1189_vm1, %v1483_v2  ;;  %v1484_v24 = vpack.c.bf16 %v1053_v12, %v1053_v12  ;;  %v1022_v26 = vadd.f32 %v2035_v16, %v983_v15  ;;  %v929_v27 = vld [vmem:[#allocation2 + $0x50] sm:$0xff]  ;;  %v863_v29 = vadd.f32 %v1547_v19, %v350_v17  ;;  %v1549_v31 = vpop.f32.mrf.mxu0  ;;  %v1597_v32 = vpop.f32.mrf.mxu1 }
 0x12c   : > { %911 = vst.msk [vmem:[#allocation2 + $0xd8] sm:$0xff] %vm305_vm0, %v878_v8  ;;  %v945_v28 = vld [vmem:[#allocation2 + $0xd0] sm:$0xff]  ;;  %v879_v30 = vadd.f32 %v1595_v20, %v366_v18  ;;  %v1038_v33 = vmax.f32 %v1006_v25, 0.0  ;;  %v968_v35 = vmul.f32 %v2030_v13, %v929_v27  ;;  %v1550_v39 = vadd.f32 %v1549_v31, %v1548_v21 }
 0x12d   : > { %1198 = vst.msk [vmem:[%s2055_s14 + $0x20] sm:$0xf] %vm1189_vm1, %v1468_v23  ;;  %1214 = vst.msk [vmem:[%s2055_s14 + $0x60] sm:$0xf] %vm1189_vm1, %v1484_v24  ;;  %v1054_v34 = vmax.f32 %v1022_v26, 0.0  ;;  %v984_v36 = vmul.f32 %v2030_v13, %v945_v28  ;;  %v1598_v40 = vadd.f32 %v1597_v32, %v1596_v22  ;;  %v1551_v41 = vpop.f32.mrf.mxu0  ;;  %v1599_v42 = vpop.f32.mrf.mxu1 }
 0x12e   : > { %896 = vst.msk [vmem:[#allocation2 + $0x60] sm:$0xff] %vm305_vm0, %v863_v29  ;;  %912 = vst.msk [vmem:[#allocation2 + $0xe0] sm:$0xff] %vm305_vm0, %v879_v30  ;;  %v1469_v43 = vpack.c.bf16 %v1038_v33, %v1038_v33  ;;  %v1007_v45 = vadd.f32 %v2035_v16, %v968_v35  ;;  %v864_v47 = vadd.f32 %v1550_v39, %v351_v37 }
 0x12f   : > { %v1485_v44 = vpack.c.bf16 %v1054_v34, %v1054_v34  ;;  %v1023_v46 = vadd.f32 %v2035_v16, %v984_v36  ;;  %v880_v48 = vadd.f32 %v1598_v40, %v367_v38  ;;  %v1552_v50 = vpop.f32.mrf.mxu0  ;;  %v1600_v52 = vpop.f32.mrf.mxu1 }
 0x130   : > { %1199 = vst.msk [vmem:[%s2055_s14 + $0x24] sm:$0xf] %vm1189_vm1, %v1469_v43  ;;  %v1039_v53 = vmax.f32 %v1007_v45, 0.0  ;;  %v930_v55 = vld [vmem:[#allocation2 + $0x58] sm:$0xff]  ;;  %v1553_v57 = vadd.f32 %v1552_v50, %v1551_v41  ;;  %v1601_v58 = vadd.f32 %v1600_v52, %v1599_v42 }
 0x131   : > { %1215 = vst.msk [vmem:[%s2055_s14 + $0x64] sm:$0xf] %vm1189_vm1, %v1485_v44  ;;  %v1055_v54 = vmax.f32 %v1023_v46, 0.0  ;;  %v969_v59 = vmul.f32 %v2030_v13, %v930_v55  ;;  %v1554_v61 = vpop.f32.mrf.mxu0  ;;  %v1602_v62 = vpop.f32.mrf.mxu1 }
 0x132   : > { %897 = vst.msk [vmem:[#allocation2 + $0x68] sm:$0xff] %vm305_vm0, %v864_v47  ;;  %913 = vst.msk [vmem:[#allocation2 + $0xe8] sm:$0xff] %vm305_vm0, %v880_v48  ;;  %v1470_v63 = vpack.c.bf16 %v1039_v53, %v1039_v53  ;;  %v865_v1 = vadd.f32 %v1553_v57, %v352_v49  ;;  %v881_v2 = vadd.f32 %v1601_v58, %v368_v51 }
 0x133   : > { %v946_v56 = vld [vmem:[#allocation2 + $0xd8] sm:$0xff]  ;;  %v1486_v0 = vpack.c.bf16 %v1055_v54, %v1055_v54  ;;  %v1008_v3 = vadd.f32 %v2035_v16, %v969_v59  ;;  %v1555_v6 = vpop.f32.mrf.mxu0  ;;  %v1603_v8 = vpop.f32.mrf.mxu1 }
 0x134   : > { %v985_v60 = vmul.f32 %v2030_v13, %v946_v56  ;;  %1200 = vst.msk [vmem:[%s2055_s14 + $0x28] sm:$0xf] %vm1189_vm1, %v1470_v63  ;;  %v1556_v11 = vadd.f32 %v1555_v6, %v1554_v61  ;;  %v1604_v12 = vadd.f32 %v1603_v8, %v1602_v62 }
 0x135   : > { %1216 = vst.msk [vmem:[%s2055_s14 + $0x68] sm:$0xf] %vm1189_vm1, %v1486_v0  ;;  %v931_v9 = vld [vmem:[#allocation2 + $0x60] sm:$0xff]  ;;  %v1040_v14 = vmax.f32 %v1008_v3, 0.0 }
 0x136   : > { %v1024_v4 = vadd.f32 %v2035_v16, %v985_v60  ;;  %v947_v10 = vld [vmem:[#allocation2 + $0xe0] sm:$0xff]  ;;  %898 = vst.msk [vmem:[#allocation2 + $0x70] sm:$0xff] %vm305_vm0, %v865_v1  ;;  %914 = vst.msk [vmem:[#allocation2 + $0xf0] sm:$0xff] %vm305_vm0, %v881_v2  ;;  %v970_v17 = vmul.f32 %v2030_v13, %v931_v9  ;;  %v866_v19 = vadd.f32 %v1556_v11, %v353_v5 }
 0x137   : > { %v986_v18 = vmul.f32 %v2030_v13, %v947_v10  ;;  %v882_v20 = vadd.f32 %v1604_v12, %v369_v7  ;;  %v1471_v21 = vpack.c.bf16 %v1040_v14, %v1040_v14 }
 0x138   : > { %v1056_v15 = vmax.f32 %v1024_v4, 0.0  ;;  %v1009_v23 = vadd.f32 %v2035_v16, %v970_v17  ;;  %899 = vst.msk [vmem:[#allocation2 + $0x78] sm:$0xff] %vm305_vm0, %v866_v19 }
 0x139   : > { %v1025_v24 = vadd.f32 %v2035_v16, %v986_v18  ;;  %v932_v25 = vld [vmem:[#allocation2 + $0x68] sm:$0xff]  ;;  %915 = vst.msk [vmem:[#allocation2 + $0xf8] sm:$0xff] %vm305_vm0, %v882_v20 }
 0x13a   : > { %v1487_v22 = vpack.c.bf16 %v1056_v15, %v1056_v15  ;;  %v948_v26 = vld [vmem:[#allocation2 + $0xe8] sm:$0xff]  ;;  %1201 = vst.msk [vmem:[%s2055_s14 + $0x2c] sm:$0xf] %vm1189_vm1, %v1471_v21  ;;  %v1041_v27 = vmax.f32 %v1009_v23, 0.0  ;;  %v971_v29 = vmul.f32 %v2030_v13, %v932_v25 }
 0x13b   : > { %v1057_v28 = vmax.f32 %v1025_v24, 0.0  ;;  %v987_v30 = vmul.f32 %v2030_v13, %v948_v26 }
 0x13c   : > { %1217 = vst.msk [vmem:[%s2055_s14 + $0x6c] sm:$0xf] %vm1189_vm1, %v1487_v22  ;;  %v1472_v31 = vpack.c.bf16 %v1041_v27, %v1041_v27  ;;  %v1010_v33 = vadd.f32 %v2035_v16, %v971_v29 }
 0x13d   : > { %v1488_v32 = vpack.c.bf16 %v1057_v28, %v1057_v28  ;;  %v1026_v34 = vadd.f32 %v2035_v16, %v987_v30  ;;  %v933_v35 = vld [vmem:[#allocation2 + $0x70] sm:$0xff] }
 0x13e   : > { %v949_v36 = vld [vmem:[#allocation2 + $0xf0] sm:$0xff]  ;;  %v972_v37 = vmul.f32 %v2030_v13, %v933_v35  ;;  %1202 = vst.msk [vmem:[%s2055_s14 + $0x30] sm:$0xf] %vm1189_vm1, %v1472_v31  ;;  %v1042_v39 = vmax.f32 %v1010_v33, 0.0 }
 0x13f   : > { %v988_v38 = vmul.f32 %v2030_v13, %v949_v36  ;;  %1218 = vst.msk [vmem:[%s2055_s14 + $0x70] sm:$0xf] %vm1189_vm1, %v1488_v32  ;;  %v1058_v40 = vmax.f32 %v1026_v34, 0.0  ;;  %v934_v45 = vld [vmem:[#allocation2 + $0x78] sm:$0xff] }
 0x140   : > { %v1011_v41 = vadd.f32 %v2035_v16, %v972_v37  ;;  %v1473_v43 = vpack.c.bf16 %v1042_v39, %v1042_v39  ;;  %v950_v46 = vld [vmem:[#allocation2 + $0xf8] sm:$0xff]  ;;  %v973_v49 = vmul.f32 %v2030_v13, %v934_v45 }
 0x141   : > { %v1027_v42 = vadd.f32 %v2035_v16, %v988_v38  ;;  %v1489_v44 = vpack.c.bf16 %v1058_v40, %v1058_v40  ;;  %v989_v50 = vmul.f32 %v2030_v13, %v950_v46 }
 0x142   : > { %v1043_v47 = vmax.f32 %v1011_v41, 0.0  ;;  %1203 = vst.msk [vmem:[%s2055_s14 + $0x34] sm:$0xf] %vm1189_vm1, %v1473_v43  ;;  %v1012_v53 = vadd.f32 %v2035_v16, %v973_v49 }
 0x143   : > { %v1059_v48 = vmax.f32 %v1027_v42, 0.0  ;;  %1219 = vst.msk [vmem:[%s2055_s14 + $0x74] sm:$0xf] %vm1189_vm1, %v1489_v44  ;;  %v1028_v54 = vadd.f32 %v2035_v16, %v989_v50 }
 0x144   : > { %v1474_v51 = vpack.c.bf16 %v1043_v47, %v1043_v47  ;;  %v1044_v13 = vmax.f32 %v1012_v53, 0.0 }
 0x145   : > { %v1490_v52 = vpack.c.bf16 %v1059_v48, %v1059_v48  ;;  %v1060_v55 = vmax.f32 %v1028_v54, 0.0 }
 0x146   : > { %1204 = vst.msk [vmem:[%s2055_s14 + $0x38] sm:$0xf] %vm1189_vm1, %v1474_v51  ;;  %v1475_v16 = vpack.c.bf16 %v1044_v13, %v1044_v13 }
 0x147   : > { %1220 = vst.msk [vmem:[%s2055_s14 + $0x78] sm:$0xf] %vm1189_vm1, %v1490_v52  ;;  %v1491_v56 = vpack.c.bf16 %v1060_v55, %v1060_v55 }
 0x148   : > { %1205 = vst.msk [vmem:[%s2055_s14 + $0x3c] sm:$0xf] %vm1189_vm1, %v1475_v16 }
 0x149   : > { %1221 = vst.msk [vmem:[%s2055_s14 + $0x7c] sm:$0xf] %vm1189_vm1, %v1491_v56 }
 0x14a   : > { %1756 = shalt.err (!%p1753_p5)
}
 0x14b   : > { %s1757_s9 = scalar_lea.hbm %s2202_s29, 2048  ;;  %s1761_s12 = scalar_lea.hbm %s2261_s4, 4096 }
 0x14c   : > { %p1758_p6 = scmp.ne.s32.totalorder %s2202_s29, %s1757_s9  ;;  %p1762_p10 = scmp.lt.s32.totalorder %s2202_s29, %s2261_s4 }
 0x14d   : > { %p1763_p11 = scmp.lt.s32.totalorder %s1761_s12, %s1757_s9 }
 0x14e   : > { %p1759_p7 = pnand %p1758_p6, %p1890_p4 }
 0x14f   : > { %p1764_p12 = por %p1763_p11, %p1762_p10 }
 0x150   : > { %p1760_p9 = pneg %p1759_p7 }
 0x152   : > { %p1765_p13 = pnand %p1764_p12, %p1760_p9 }
 0x154   : > { %1768 = shalt.err (!%p1765_p13)
}
 0x155   : > { %s1823_s14 = smov 64   ;;  %s1824_s21 = smov 4  }
 0x156   : > { %1621 = dma.vmem_to_hbm [thread:$0]  (%p1890_p4), %s2204_s22, 2048, %s2202_s29, %s2212_s18, %s1823_s14, %s1823_s14, %s1824_s21  }
 0x157 PF: > { %p1627_p0 = scmp.ge.s32.totalorder %s1819_s20, 2  ;;  %s1252_s24 = sand.u32 1, %s1799_s15  }
 0x158   : > { %s1253_s26 = scalar_lea.sflag [#allocation4], %s1252_s24 }
 0x159   : > { %p1624_p1 = pnand %p1627_p0, %p1897_p8 }
 0x15b   : > { %p1625_p2 = pneg %p1624_p1 }
 0x15d   : > { %1794 = dma.done.wait (%p1625_p2), %s1253_s26, 2048  }
 0x15e   : > { %1796 = vsyncadd (%p1625_p2), %s1253_s26, 4294965248  ;;  %s17_s20 = sadd.s32 1, %s1819_s20   ;;  %s2264_s15 = smov %s1803_s16 }
 0x15f   : > { %p14_p3 = scmp.ge.s32.totalorder %s17_s20, 4   ;;  %s2265_s16 = smov %s1807_s17 }
 0x160   : > { %s2266_s17 = smov %s1903_s28  ;;  %s2267_s18 = smov %s1815_s19 }
 0x161   : > { %s2268_s19 = smov %s2270_s23  ;;  %16 = sbr.rel (!%p14_p3) target bundleno = 4 (0x4), region = 88 }
 0x166   :  { %1258 = vsyncpa [#allocation4], 1 }
 0x167   :  { %1260 = vsyncpa [#allocation4 + $0x1], 1 }

</bundles_post_ra>
